<compile_context>
chip_gen: v7x
topology: tpu7x:2x2x1
jax: 0.10.0
libtpu: 0.0.40
codegen_flags: <defaults>
</compile_context>

<pallas_src>
import math
import functools

import jax
import jax.numpy as jnp
from jax.experimental import pallas as pl
from jax.experimental.pallas import tpu as pltpu


# ----------------------------------------------------------------------------
# hardware-aware configuration
# ----------------------------------------------------------------------------

def _vmem_capacity_bytes():
    try:
        return int(pltpu.get_tpu_info().vmem_capacity_bytes)
    except Exception:
        # conservative fallback (safe on every generation)
        return 64 * 1024 * 1024


_VMEM_CAP = _vmem_capacity_bytes()
# <=48 MiB on 64 MiB parts (v7x), 96 MiB on 128 MiB parts (v5e/v6e)
_VMEM_LIMIT = min(96 * 1024 * 1024, (_VMEM_CAP * 3) // 4)
_MAX_SEQ_TILE = 256 if _VMEM_CAP <= 64 * 1024 * 1024 else 512


def _pick_seq_tile(S):
    for t in (512, 256, 128):
        if t <= _MAX_SEQ_TILE and S % t == 0:
            return t
    return S


def _pick_ffn_chunk(inner):
    for c in (1024, 512, 256, 128):
        if c <= inner and inner % c == 0:
            return c
    return inner


def _compiler_params():
    return pltpu.CompilerParams(
        dimension_semantics=("parallel", "parallel"),
        vmem_limit_bytes=_VMEM_LIMIT,
    )


@functools.lru_cache(maxsize=None)
def _single_buffer_supported():
    """Probe whether pipeline_mode=pl.Buffered(1) compiles on this install."""
    try:
        def k(x_ref, o_ref):
            o_ref[...] = x_ref[...]

        x = jnp.zeros((8, 128), jnp.float32)
        out = pl.pallas_call(
            k,
            out_shape=jax.ShapeDtypeStruct((8, 128), jnp.float32),
            grid=(1,),
            in_specs=[pl.BlockSpec((8, 128), lambda i: (0, 0),
                                   pipeline_mode=pl.Buffered(1))],
            out_specs=pl.BlockSpec((8, 128), lambda i: (0, 0)),
        )(x)
        jax.block_until_ready(out)
        return True
    except Exception:
        return False


def _const_spec(shape):
    """BlockSpec for a grid-invariant operand (weights / biases / LN params).

    Constant index_map -> single-buffered when supported (double-buffering a
    never-changing block only burns VMEM)."""
    idx = lambda b, s, _shape=shape: tuple(0 for _ in _shape)
    if _single_buffer_supported():
        return pl.BlockSpec(shape, idx, pipeline_mode=pl.Buffered(1))
    return pl.BlockSpec(shape, idx)


# ----------------------------------------------------------------------------
# math helpers
# ----------------------------------------------------------------------------

def _erf_approx(x):
    # Abramowitz & Stegun 7.1.26 (max abs error ~1.5e-7); uses only exp/abs/where.
    a1, a2, a3, a4, a5 = (0.254829592, -0.284496736, 1.421413741,
                          -1.453152027, 1.061405429)
    p = 0.3275911
    ax = jnp.abs(x)
    t = 1.0 / (1.0 + p * ax)
    poly = ((((a5 * t + a4) * t + a3) * t + a2) * t + a1) * t
    y = 1.0 - poly * jnp.exp(-ax * ax)
    return jnp.where(x < 0.0, -y, y)


def _gelu_erf(x):
    # x * 0.5 * (1 + erf(x / sqrt(2)))  -- matches the torch (erf-based) gelu.
    return x * 0.5 * (1.0 + _erf_approx(x * (1.0 / math.sqrt(2.0))))


def _layernorm(y, gamma, beta, eps):
    u = jnp.mean(y, axis=-1, keepdims=True)
    var = jnp.mean(jnp.square(y - u), axis=-1, keepdims=True)
    return gamma * ((y - u) * jax.lax.rsqrt(var + eps)) + beta


# ----------------------------------------------------------------------------
# kernels
# ----------------------------------------------------------------------------

def _kv_proj_kernel(x_ref, wkv_ref, bkv_ref, k_ref, v_ref):
    """Fused K/V projection for one (batch, seq-tile) block. Outputs bf16."""
    H = k_ref.shape[-1]
    xb = x_ref[0].astype(jnp.bfloat16)                          # (ts, H)
    kv = jnp.dot(xb, wkv_ref[...],
                 preferred_element_type=jnp.float32)            # (ts, 2H) f32
    kv = (kv + bkv_ref[...]).astype(jnp.bfloat16)
    k_ref[0] = kv[:, :H]
    v_ref[0] = kv[:, H:]


def _layer_core_kernel(x_ref, mask_ref, k_ref, v_ref,
                       wq_ref, bq_ref, wd_ref, bd_ref, g1_ref, be1_ref,
                       w1_ref, b1_ref, w2_ref, b2_ref, g2_ref, be2_ref,
                       o_ref, ctx_ref,
                       *, num_heads, head_dim, eps, ffn_chunk):
    """Q-proj + attention + output proj + LN1 + chunked FFN + LN2 for one tile."""
    tq = x_ref.shape[1]
    H = num_heads * head_dim
    S = k_ref.shape[1]

    x = x_ref[0]                                                # (tq, H) f32
    xb = x.astype(jnp.bfloat16)

    # --- Q projection for this tile (1/sqrt(hd) folded into wq/bq) ----------
    q = jnp.dot(xb, wq_ref[...], preferred_element_type=jnp.float32)
    q = (q + bq_ref[...]).astype(jnp.bfloat16)                  # (tq, H)

    k = k_ref[0]                                                # (S, H) bf16
    v = v_ref[0]                                                # (S, H) bf16

    # Mask broadcast hoisted once out of the head loop.
    mask_b = jnp.broadcast_to(mask_ref[0], (tq, S)).astype(jnp.float32)

    # --- per-head attention; context written into a bf16 VMEM scratch -------
    for h in range(num_heads):
        lo = h * head_dim
        hi = lo + head_dim
        qh = q[:, lo:hi]                                        # (tq, hd)
        kh = k[:, lo:hi]                                        # (S,  hd)
        vh = v[:, lo:hi]                                        # (S,  hd)

        s = jax.lax.dot_general(qh, kh, (((1,), (1,)), ((), ())),
                                preferred_element_type=jnp.float32)  # (tq, S)
        s = s + mask_b

        m = jnp.max(s, axis=-1, keepdims=True)
        e = jnp.exp(s - m)
        denom = jnp.sum(e, axis=-1, keepdims=True)
        probs = (e * pl.reciprocal(denom, approx=True)).astype(jnp.bfloat16)

        ctx_ref[:, lo:hi] = jnp.dot(
            probs, vh, preferred_element_type=jnp.float32).astype(jnp.bfloat16)

    # --- ONE full-width output projection (K = H, full MXU utilization) -----
    attn = jnp.dot(ctx_ref[...], wd_ref[...],
                   preferred_element_type=jnp.float32) + bd_ref[...]
    a = _layernorm(attn + x, g1_ref[...], be1_ref[...], eps)    # (tq, H) f32

    # --- FFN, chunked over the 4H inner dimension ----------------------------
    ab = a.astype(jnp.bfloat16)
    acc = jnp.zeros((tq, H), dtype=jnp.float32)
    inner = w1_ref.shape[1]
    for c in range(inner // ffn_chunk):
        clo = c * ffn_chunk
        chi = clo + ffn_chunk
        h1 = jnp.dot(ab, w1_ref[:, clo:chi],
                     preferred_element_type=jnp.float32) + b1_ref[:, clo:chi]
        h1 = _gelu_erf(h1)
        acc = acc + jnp.dot(h1.astype(jnp.bfloat16), w2_ref[clo:chi, :],
                            preferred_element_type=jnp.float32)

    y = acc + b2_ref[...] + a
    o_ref[0] = _layernorm(y, g2_ref[...], be2_ref[...], eps)


# ----------------------------------------------------------------------------
# wrappers
# ----------------------------------------------------------------------------

def transformer_layer(x, mask2, p, *, num_heads, eps=1e-12):
    """One encoder layer: SelfAttention + Intermediate. x: (B,S,H) f32."""
    B, S, H = x.shape
    hd = H // num_heads
    ts = _pick_seq_tile(S)
    cp = _compiler_params()
    inner = p['w1'].shape[1]
    ffn_chunk = _pick_ffn_chunk(inner)

    # Fold 1/sqrt(head_dim) into the query weights/bias; fuse K/V weights.
    scale = 1.0 / math.sqrt(hd)
    wq = (p['wq'] * scale).astype(jnp.bfloat16)                    # (H, H)
    bq = p['bq'] * scale                                           # (1, H)
    wkv = jnp.concatenate([p['wk'], p['wv']], axis=1).astype(jnp.bfloat16)  # (H, 2H)
    bkv = jnp.concatenate([p['bk'], p['bv']], axis=1)              # (1, 2H)

    # ---- fused K/V projection (bf16 inter-kernel activations) --------------
    k, v = pl.pallas_call(
        _kv_proj_kernel,
        out_shape=(jax.ShapeDtypeStruct((B, S, H), jnp.bfloat16),
                   jax.ShapeDtypeStruct((B, S, H), jnp.bfloat16)),
        grid_spec=pltpu.PrefetchScalarGridSpec(
            num_scalar_prefetch=0,
            grid=(B, S // ts),
            in_specs=[
                pl.BlockSpec((1, ts, H), lambda b, s: (b, s, 0)),  # x
                _const_spec((H, 2 * H)),                           # wkv
                _const_spec((1, 2 * H)),                           # bkv
            ],
            out_specs=(pl.BlockSpec((1, ts, H), lambda b, s: (b, s, 0)),
                       pl.BlockSpec((1, ts, H), lambda b, s: (b, s, 0))),
        ),
        compiler_params=cp,
    )(x, wkv, bkv)

    # ---- fused Q-proj + attention + out-proj + LN1 + FFN + LN2 -------------
    out = pl.pallas_call(
        functools.partial(_layer_core_kernel, num_heads=num_heads,
                          head_dim=hd, eps=eps, ffn_chunk=ffn_chunk),
        out_shape=jax.ShapeDtypeStruct((B, S, H), jnp.float32),
        grid_spec=pltpu.PrefetchScalarGridSpec(
            num_scalar_prefetch=0,
            grid=(B, S // ts),
            in_specs=[
                pl.BlockSpec((1, ts, H), lambda b, qi: (b, qi, 0)),  # x tile
                pl.BlockSpec((1, 1, S), lambda b, qi: (b, 0, 0)),    # additive mask
                pl.BlockSpec((1, S, H), lambda b, qi: (b, 0, 0)),    # k (full seq)
                pl.BlockSpec((1, S, H), lambda b, qi: (b, 0, 0)),    # v (full seq)
                _const_spec((H, H)),        # wq (pre-scaled, bf16)
                _const_spec((1, H)),        # bq (pre-scaled)
                _const_spec((H, H)),        # wd
                _const_spec((1, H)),        # bd
                _const_spec((1, H)),        # ln1 gamma
                _const_spec((1, H)),        # ln1 beta
                _const_spec((H, inner)),    # w1
                _const_spec((1, inner)),    # b1
                _const_spec((inner, H)),    # w2
                _const_spec((1, H)),        # b2
                _const_spec((1, H)),        # ln2 gamma
                _const_spec((1, H)),        # ln2 beta
            ],
            out_specs=pl.BlockSpec((1, ts, H), lambda b, qi: (b, qi, 0)),
            scratch_shapes=[pltpu.VMEM((ts, H), jnp.bfloat16)],      # ctx scratch
        ),
        compiler_params=cp,
    )(x, mask2, k, v,
      wq, bq,
      p['wd'].astype(jnp.bfloat16), p['bd'], p['ln1_g'], p['ln1_b'],
      p['w1'].astype(jnp.bfloat16), p['b1'],
      p['w2'].astype(jnp.bfloat16), p['b2'], p['ln2_g'], p['ln2_b'])

    return out


def encoder(x, mask, layer_params_list, *, num_heads, eps=1e-12,
            output_all_encoded_layers=True):
    """x: (B,S,H) f32; mask: (B,1,1,S) f32 additive mask. Returns list of layers."""
    B, S, H = x.shape
    mask2 = mask.reshape(B, 1, S).astype(jnp.float32)
    outs = []
    h = x
    for p in layer_params_list:
        h = transformer_layer(h, mask2, p, num_heads=num_heads, eps=eps)
        if output_all_encoded_layers:
            outs.append(h)
    if not output_all_encoded_layers:
        outs.append(h)
    return outs


# ----------------------------------------------------------------------------
# plain-JAX f32 reference (mirrors the PyTorch forward, eval mode)
# ----------------------------------------------------------------------------

def _encoder_reference(x, mask, layers, *, num_heads, eps=1e-12):
    from jax.scipy.special import erf
    B, S, H = x.shape
    hd = H // num_heads

    def ln(t, g, b):
        u = t.mean(-1, keepdims=True)
        s = ((t - u) ** 2).mean(-1, keepdims=True)
        return g * ((t - u) / jnp.sqrt(s + eps)) + b

    def split(t):
        return t.reshape(B, S, num_heads, hd).transpose(0, 2, 1, 3)

    outs = []
    h = x
    for p in layers:
        q = split(h @ p['wq'] + p['bq'])
        k = split(h @ p['wk'] + p['bk'])
        v = split(h @ p['wv'] + p['bv'])
        scores = jnp.einsum('bhqd,bhkd->bhqk', q, k) / math.sqrt(hd) + mask
        probs = jax.nn.softmax(scores, axis=-1)
        ctx = jnp.einsum('bhqk,bhkd->bhqd', probs, v)
        ctx = ctx.transpose(0, 2, 1, 3).reshape(B, S, H)
        attn = ln(ctx @ p['wd'] + p['bd'] + h, p['ln1_g'], p['ln1_b'])
        h1 = attn @ p['w1'] + p['b1']
        h1 = h1 * 0.5 * (1.0 + erf(h1 / math.sqrt(2.0)))
        h2 = h1 @ p['w2'] + p['b2']
        h = ln(h2 + attn, p['ln2_g'], p['ln2_b'])
        outs.append(h)
    return outs


# ----------------------------------------------------------------------------
# test harness
# ----------------------------------------------------------------------------

def _make_layer_params(key, H):
    ks = jax.random.split(key, 16)

    def lin(kw, kb, fi, fo):
        bound = 1.0 / math.sqrt(fi)
        w = jax.random.uniform(kw, (fi, fo), minval=-bound, maxval=bound,
                               dtype=jnp.float32)
        b = jax.random.uniform(kb, (1, fo), minval=-bound, maxval=bound,
                               dtype=jnp.float32)
        return w, b

    wq, bq = lin(ks[0], ks[1], H, H)
    wk, bk = lin(ks[2], ks[3], H, H)
    wv, bv = lin(ks[4], ks[5], H, H)
    wd, bd = lin(ks[6], ks[7], H, H)
    w1, b1 = lin(ks[8], ks[9], H, 4 * H)
    w2, b2 = lin(ks[10], ks[11], 4 * H, H)
    ln1_g = 1.0 + 0.1 * jax.random.normal(ks[12], (1, H), dtype=jnp.float32)
    ln1_b = 0.1 * jax.random.normal(ks[13], (1, H), dtype=jnp.float32)
    ln2_g = 1.0 + 0.1 * jax.random.normal(ks[14], (1, H), dtype=jnp.float32)
    ln2_b = 0.1 * jax.random.normal(ks[15], (1, H), dtype=jnp.float32)
    return dict(wq=wq, bq=bq, wk=wk, bk=bk, wv=wv, bv=bv, wd=wd, bd=bd,
                ln1_g=ln1_g, ln1_b=ln1_b, w1=w1, b1=b1, w2=w2, b2=b2,
                ln2_g=ln2_g, ln2_b=ln2_b)


if __name__ == "__main__":
    B, S, H = 2, 8, 32
    NUM_HEADS = 2
    NUM_LAYERS = 2

    key = jax.random.PRNGKey(0)
    kx, kmask, *klayers = jax.random.split(key, 2 + NUM_LAYERS)

    x = jax.random.normal(kx, (B, S, H), dtype=jnp.float32)

    # BERT-style additive mask: 0 = attend, -10000 = masked.
    keep = (jax.random.uniform(kmask, (B, 1, 1, S)) > 0.2).astype(jnp.float32)
    mask = (1.0 - keep) * -10000.0

    layers = [_make_layer_params(k, H) for k in klayers]

    outs = encoder(x, mask, layers, num_heads=NUM_HEADS,
                   output_all_encoded_layers=True)
    outs = jax.block_until_ready(outs)

    refs = _encoder_reference(x, mask, layers, num_heads=NUM_HEADS)

    assert len(outs) == NUM_LAYERS
    for li, (o, r) in enumerate(zip(outs, refs)):
        assert o.shape == (B, S, H)
        max_diff = float(jnp.max(jnp.abs(o - r)))
        # bf16 matmuls + approx reciprocal -> looser tolerance than pure f32.
        assert jnp.allclose(o, r, atol=5e-2, rtol=5e-2), \
            f"layer {li}: max abs diff {max_diff}"

    print("KERNEL_OK")
</pallas_src>

<mosaic_0001>
module attributes {stable_mosaic.version = 11 : i64} {
  func.func @k(%arg0: i32, %arg1: memref<8x128xf32, #tpu.memory_space<vmem>>, %arg2: memref<8x128xf32, #tpu.memory_space<vmem>>) attributes {dimension_semantics = [#tpu.dimension_semantics<arbitrary>], iteration_bounds = array<i64: 1>, scalar_prefetch = 0 : i64, scratch_operands = 0 : i64, tpu.core_type = #tpu.core_type<tc>, window_params = [{pipeline_mode = #tpu.pipeline_mode<synchronous>, transform_indices = @transform_0, window_bounds = array<i64: 8, 128>}, {pipeline_mode = #tpu.pipeline_mode<synchronous>, transform_indices = @transform_1, window_bounds = array<i64: 8, 128>}]} {
    %c0 = arith.constant 0 : index
    %c0_0 = arith.constant 0 : index
    %0 = vector.load %arg1[%c0, %c0_0] : memref<8x128xf32, #tpu.memory_space<vmem>>, vector<8x128xf32>
    %c0_1 = arith.constant 0 : index
    %c0_2 = arith.constant 0 : index
    %1 = vector.load %arg2[%c0_1, %c0_2] : memref<8x128xf32, #tpu.memory_space<vmem>>, vector<8x128xf32>
    tpu.vector_store %arg2[%c0_1, %c0_2], %0 {strides = array<i32>} : memref<8x128xf32, #tpu.memory_space<vmem>>, vector<8x128xf32>,
    return
  }
  func.func @transform_0(%arg0: i32) -> (i32, i32) {
    %c0_i32 = arith.constant 0 : i32
    %c0_i32_0 = arith.constant 0 : i32
    %c0_i32_1 = arith.constant 0 : i32
    return %c0_i32, %c0_i32_0 : i32, i32
  }
  func.func @transform_1(%arg0: i32) -> (i32, i32) {
    %c0_i32 = arith.constant 0 : i32
    %c0_i32_0 = arith.constant 0 : i32
    %c0_i32_1 = arith.constant 0 : i32
    return %c0_i32, %c0_i32_0 : i32, i32
  }
}

module attributes {stable_mosaic.version = 11 : i64} {
  func.func @_kv_proj_kernel(%arg0: i32, %arg1: i32, %arg2: memref<1x8x32xf32, #tpu.memory_space<vmem>>, %arg3: memref<32x64xbf16, #tpu.memory_space<vmem>>, %arg4: memref<1x64xf32, #tpu.memory_space<vmem>>, %arg5: memref<1x8x32xbf16, #tpu.memory_space<vmem>>, %arg6: memref<1x8x32xbf16, #tpu.memory_space<vmem>>) attributes {dimension_semantics = [#tpu.dimension_semantics<parallel>, #tpu.dimension_semantics<parallel>], iteration_bounds = array<i64: 2, 1>, scalar_prefetch = 0 : i64, scratch_operands = 0 : i64, tpu.core_type = #tpu.core_type<tc>, window_params = [{transform_indices = @transform_0, window_bounds = array<i64: 1, 8, 32>}, {pipeline_mode = #tpu.pipeline_mode<synchronous>, transform_indices = @transform_1, window_bounds = array<i64: 32, 64>}, {pipeline_mode = #tpu.pipeline_mode<synchronous>, transform_indices = @transform_2, window_bounds = array<i64: 1, 64>}, {transform_indices = @transform_3, window_bounds = array<i64: 1, 8, 32>}, {transform_indices = @transform_4, window_bounds = array<i64: 1, 8, 32>}]} {
    %c0 = arith.constant 0 : index
    %c0_0 = arith.constant 0 : index
    %c0_1 = arith.constant 0 : index
    %0 = vector.load %arg2[%c0, %c0_0, %c0_1] : memref<1x8x32xf32, #tpu.memory_space<vmem>>, vector<1x8x32xf32>
    %1 = vector.shape_cast %0 : vector<1x8x32xf32> to vector<8x32xf32>
    %2 = arith.truncf %1 : vector<8x32xf32> to vector<8x32xbf16>
    %c0_2 = arith.constant 0 : index
    %c0_3 = arith.constant 0 : index
    %3 = vector.load %arg3[%c0_2, %c0_3] : memref<32x64xbf16, #tpu.memory_space<vmem>>, vector<32x64xbf16>
    %cst = arith.constant dense<0.000000e+00> : vector<8x64xf32>
    %4 = tpu.matmul %2, %3, %cst {dimension_numbers = #tpu.dot_dimension_numbers<[1], [0], [0], [1], [0, 0, 1, 1], [], []>} : vector<8x32xbf16>, vector<32x64xbf16>, vector<8x64xf32> -> vector<8x64xf32>
    %c0_4 = arith.constant 0 : index
    %c0_5 = arith.constant 0 : index
    %5 = vector.load %arg4[%c0_4, %c0_5] : memref<1x64xf32, #tpu.memory_space<vmem>>, vector<1x64xf32>
    %6 = vector.broadcast %5 : vector<1x64xf32> to vector<8x64xf32>
    %7 = arith.addf %4, %6 : vector<8x64xf32>
    %8 = arith.truncf %7 : vector<8x64xf32> to vector<8x64xbf16>
    %9 = vector.extract_strided_slice %8 {offsets = [0, 0], sizes = [8, 32], strides = [1, 1]} : vector<8x64xbf16> to vector<8x32xbf16>
    %c0_6 = arith.constant 0 : index
    %c0_7 = arith.constant 0 : index
    %c0_8 = arith.constant 0 : index
    %10 = vector.load %arg5[%c0_6, %c0_7, %c0_8] : memref<1x8x32xbf16, #tpu.memory_space<vmem>>, vector<1x8x32xbf16>
    %11 = vector.shape_cast %10 : vector<1x8x32xbf16> to vector<8x32xbf16>
    %12 = vector.shape_cast %9 : vector<8x32xbf16> to vector<1x8x32xbf16>
    tpu.vector_store %arg5[%c0_6, %c0_7, %c0_8], %12 {strides = array<i32>} : memref<1x8x32xbf16, #tpu.memory_space<vmem>>, vector<1x8x32xbf16>,
    %13 = vector.extract_strided_slice %8 {offsets = [0, 32], sizes = [8, 32], strides = [1, 1]} : vector<8x64xbf16> to vector<8x32xbf16>
    %c0_9 = arith.constant 0 : index
    %c0_10 = arith.constant 0 : index
    %c0_11 = arith.constant 0 : index
    %14 = vector.load %arg6[%c0_9, %c0_10, %c0_11] : memref<1x8x32xbf16, #tpu.memory_space<vmem>>, vector<1x8x32xbf16>
    %15 = vector.shape_cast %14 : vector<1x8x32xbf16> to vector<8x32xbf16>
    %16 = vector.shape_cast %13 : vector<8x32xbf16> to vector<1x8x32xbf16>
    tpu.vector_store %arg6[%c0_9, %c0_10, %c0_11], %16 {strides = array<i32>} : memref<1x8x32xbf16, #tpu.memory_space<vmem>>, vector<1x8x32xbf16>,
    return
  }
  func.func @transform_0(%arg0: i32, %arg1: i32) -> (i32, i32, i32) {
    %c0_i32 = arith.constant 0 : i32
    %c0_i32_0 = arith.constant 0 : i32
    return %arg0, %arg1, %c0_i32 : i32, i32, i32
  }
  func.func @transform_1(%arg0: i32, %arg1: i32) -> (i32, i32) {
    %c0_i32 = arith.constant 0 : i32
    %c0_i32_0 = arith.constant 0 : i32
    %c0_i32_1 = arith.constant 0 : i32
    return %c0_i32, %c0_i32_0 : i32, i32
  }
  func.func @transform_2(%arg0: i32, %arg1: i32) -> (i32, i32) {
    %c0_i32 = arith.constant 0 : i32
    %c0_i32_0 = arith.constant 0 : i32
    %c0_i32_1 = arith.constant 0 : i32
    return %c0_i32, %c0_i32_0 : i32, i32
  }
  func.func @transform_3(%arg0: i32, %arg1: i32) -> (i32, i32, i32) {
    %c0_i32 = arith.constant 0 : i32
    %c0_i32_0 = arith.constant 0 : i32
    return %arg0, %arg1, %c0_i32 : i32, i32, i32
  }
  func.func @transform_4(%arg0: i32, %arg1: i32) -> (i32, i32, i32) {
    %c0_i32 = arith.constant 0 : i32
    %c0_i32_0 = arith.constant 0 : i32
    return %arg0, %arg1, %c0_i32 : i32, i32, i32
  }
}

</mosaic_0001>

<bundles_post_ra>
// kernel: tpu_custom_call.1
= control target key start
LH: loop header
LB: loop body
LE: loop exit
PB: predicated region body
PF: predicated region fallthrough
CT: control target
= control target key end

     0   :  { %6 = vsyncpa [#allocation3], 0  ;;  %s124_s0 = inlined_call_operand.hbm [shape: f32[8,128], index: 0, kind: input, shape index: {}]   ;;  %s125_s1 = inlined_call_operand.hbm [shape: f32[8,128], index: 1, kind: output, shape index: {}]  }
   0x1   :  { %7 = vsyncpa [#allocation4], 0  ;;  %s88_s6 = smov [#allocation2]   ;;  %s40_s10 = scalar_lea.hbm %s124_s0, 128 }
   0x2   :  { %s14_s7 = sshll.u32 %s88_s6, 4  ;;  %p41_p0 = scmp.ne.s32.totalorder %s124_s0, %s40_s10  ;;  %s15_s7 = int_to_ptr.vmem [resolvable:$true] %s14_s7 }
   0x3   :  { %p44_p1 = scmp.lt.u32.totalorder %s40_s10, %s124_s0 }
   0x5   :  { %p46_p2 = pnand %p44_p1, %p41_p0 }
   0x7   :  { %49 = shalt.err (!%p46_p2)
}
   0x8   :  { %s50_s15 = scalar_lea.vmem %s15_s7, 128  ;;  %p55_p4 = scmp.lt.s32.totalorder %s15_s7, %s15_s7 }
   0x9   :  { %p51_p3 = scmp.ne.s32.totalorder %s15_s7, %s50_s15  ;;  %p56_p5 = scmp.lt.s32.totalorder %s50_s15, %s50_s15 }
   0xb   :  { %p57_p6 = por %p56_p5, %p55_p4 }
   0xd   :  { %p58_p7 = pnand %p57_p6, %p51_p3 }
   0xf   :  { %61 = shalt.err (!%p58_p7)
}
  0x10   :  { %17 = dma.hbm_to_vmem [thread:$0]  %s124_s0, 128, %s15_s7, [#allocation3]  }
  0x11   :  { %84 = dma.done.wait [#allocation3], 128  }
  0x12   :  { %85 = vsyncadd [#allocation3], 4294967168  ;;  %s89_s18 = smov [#allocation5]   ;;  %v21_v0 = vld [vmem:[#allocation2] sm:$0xff] }
  0x13   :  { %s29_s19 = sshll.u32 %s89_s18, 4  ;;  %22 = vst [vmem:[#allocation5] sm:$0xff] %v21_v0  ;;  %s30_s19 = int_to_ptr.vmem [resolvable:$true] %s29_s19 }
  0x14   :  { %s62_s20 = scalar_lea.vmem %s30_s19, 128  ;;  %p67_p9 = scmp.lt.s32.totalorder %s30_s19, %s30_s19 }
  0x15   :  { %p63_p8 = scmp.ne.s32.totalorder %s30_s19, %s62_s20  ;;  %p68_p10 = scmp.lt.s32.totalorder %s62_s20, %s62_s20 }
  0x17   :  { %p69_p11 = por %p68_p10, %p67_p9 }
  0x19   :  { %p70_p12 = pnand %p69_p11, %p63_p8 }
  0x1b   :  { %73 = shalt.err (!%p70_p12)
}
  0x1c   :  { %s74_s23 = scalar_lea.hbm %s125_s1, 128 }
  0x1d   :  { %p75_p13 = scmp.ne.s32.totalorder %s125_s1, %s74_s23  ;;  %p78_p0 = scmp.lt.u32.totalorder %s74_s23, %s125_s1 }
  0x1f   :  { %p80_p1 = pnand %p78_p0, %p75_p13 }
  0x21   :  { %83 = shalt.err (!%p80_p1)
}
  0x22   :  { %32 = dma.vmem_to_hbm [thread:$0]  %s30_s19, 128, %s125_s1, [#allocation4]  }
  0x23   :  { %86 = dma.done.wait [#allocation4], 128  }
  0x24   :  { %87 = vsyncadd [#allocation4], 4294967168 }
  0x25   :  { %36 = vsyncpa [#allocation3], 1 }
  0x26   :  { %37 = vsyncpa [#allocation4], 1 }

// kernel: tpu_custom_call.1
= control target key start
LH: loop header
LB: loop body
LE: loop exit
PB: predicated region body
PF: predicated region fallthrough
CT: control target
= control target key end

     0   :  { %10 = vsyncpa [#allocation3], 0  ;;  %s1084_s0 = inlined_call_operand.hbm [shape: f32[2,8,32], index: 0, kind: input, shape index: {}]   ;;  %s1085_s1 = inlined_call_operand.hbm [shape: bf16[32,64], index: 1, kind: input, shape index: {}]   ;;  %s1086_s2 = inlined_call_operand.vmem [shape: f32[1,64], index: 2, kind: input, shape index: {}]   ;;  %s1087_s3 = inlined_call_operand.hbm [shape: bf16[2,8,32], index: 3, kind: output, shape index: {0}]   ;;  %s1088_s4 = inlined_call_operand.hbm [shape: bf16[2,8,32], index: 4, kind: output, shape index: {1}]  }
   0x1   :  { %12 = vsyncpa [#allocation3 + $0x1], 0 }
   0x2   :  { %13 = vsyncpa [#allocation6], 0 }
   0x3   :  { %14 = vsyncpa [#allocation4], 0 }
   0x4   :  { %16 = vsyncpa [#allocation4 + $0x1], 0 }
   0x5   :  { %17 = vsyncpa [#allocation9], 0 }
   0x6   :  { %19 = vsyncpa [#allocation9 + $0x1], 0  ;;  %s827_s15 = smov 0   ;;  %s829_s16 = smov 0  }
   0x7   :  { %s831_s17 = smov 0   ;;  %s833_s18 = smov 0  }
   0x8   :  { %s835_s19 = smov 0   ;;  %s837_s20 = smov 0  }
   0x9 LB: > { %s495_s21 = sadd.s32 4294967295, %s791_s20   ;;  %s496_s22 = sadd.s32 4294967294, %s791_s20   ;;  %s791_s20 = sphi %s837_s20, %s25_s20   ;;  %s787_s19 = sphi %s835_s19, %s1112_s19   ;;  %s783_s18 = sphi %s833_s18, %s1111_s18   ;;  %s779_s17 = sphi %s831_s17, %s1110_s17   ;;  %s775_s16 = sphi %s829_s16, %s1109_s16   ;;  %s771_s15 = sphi %s827_s15, %s1108_s15  }
   0xa   : > { %p59_p0 = scmp.ne.s32.totalorder %s775_s16, %s771_s15  ;;  %p861_p1 = scmp.eq.s32.totalorder %s495_s21, 0 }
   0xb   : > { %p865_p2 = scmp.eq.s32.totalorder %s495_s21, 1  ;;  %p133_p3 = scmp.eq.s32.totalorder %s496_s22, 1 }
   0xc   : > { %s1093_s23 = scalar_select %p861_p1, 1, 0 }
   0xd   : > { %s1094_s24 = scalar_select %p865_p2, 1, 0 }
   0xe   : > { %p871_p4 = por %p861_p1, %p59_p0  ;;  %p497_p5 = scmp.ge.s32.totalorder %s791_s20, 1 }
   0xf   : > { %p876_p6 = por %p133_p3, %p59_p0  ;;  %p168_p7 = scmp.lt.s32.totalorder %s791_s20, 3 }
  0x10   : > { %s1095_s25 = scalar_select %p871_p4, 1, 0 }
  0x11   : > { %s1096_s26 = scalar_select %p876_p6, 1, 0 }
  0x12   : > { %p881_p8 = pnand %p497_p5, %p168_p7  ;;  %s793_s28 = smov [#allocation5]  }
  0x13   : > { %s180_s29 = sshll.u32 %s793_s28, 4  ;;  %s37_s5 = sadd.s32 1, %s787_s19  ;;  %s181_s29 = int_to_ptr.vmem [resolvable:$true] %s180_s29 }
  0x14   : > { %s1097_s27 = scalar_select %p881_p8, 1, 0 }
  0x15   : > { %p540_p9 = pneg %p881_p8  ;;  %s615_s8 = scalar_lea.hbm %s1085_s1, 256 }
  0x16   : > { %p616_p12 = scmp.ne.s32.totalorder %s1085_s1, %s615_s8  ;;  %p622_p5 = scmp.lt.u32.totalorder %s615_s8, %s1085_s1 }
  0x17   : > { %p890_p11 = pnand %p540_p9, %p861_p1 }
  0x19   : > { %p617_p13 = pneg %p890_p11 }
  0x1b   : > { %p618_p0 = pnand %p617_p13, %p616_p12 }
  0x1d   : > { %p619_p3 = pneg %p618_p0 }
  0x1f   : > { %p624_p7 = pnand %p622_p5, %p619_p3 }
  0x21   : > { %627 = shalt.err (!%p624_p7)
}
  0x22   : > { %s628_s13 = scalar_lea.vmem %s181_s29, 256  ;;  %p636_p1 = scmp.lt.s32.totalorder %s181_s29, %s181_s29 }
  0x23   : > { %p629_p9 = scmp.ne.s32.totalorder %s181_s29, %s628_s13  ;;  %p637_p4 = scmp.lt.s32.totalorder %s628_s13, %s628_s13 }
  0x25   : > { %p631_p10 = pnand %p629_p9, %p617_p13  ;;  %p638_p8 = por %p637_p4, %p636_p1 }
  0x27   : > { %p632_p6 = pneg %p631_p10 }
  0x29   : > { %p639_p2 = pnand %p638_p8, %p632_p6 }
  0x2b   : > { %642 = shalt.err (!%p639_p2)
}
  0x2c   : > { %s794_s14 = smov 64   ;;  %s795_s21 = smov 4  }
  0x2d   : > { %543 = dma.hbm_to_vmem [thread:$0]  (!%p890_p11), %s1085_s1, 256, %s181_s29, [#allocation6], %s794_s14, %s794_s14, %s795_s21  }
  0x2e   : > { %p39_p1 = scmp.ge.s32.totalorder %s37_s5, 2  ;;  %s46_s6 = sadd.s32 1, %s779_s17 }
  0x2f   : > { %p53_p2 = scmp.ne.s32.totalorder %s779_s17, %s775_s16  ;;  %p54_p4 = scmp.eq.s32.totalorder %s791_s20, 0 }
  0x30   : > { %s1114_s5 = smov (%p39_p1, %s37_s5), 0  ;;  %p1100_p8 = scmp.ne.s32.totalorder %s1094_s24, 0 }
  0x31   : > { %p917_p6 = por %p54_p4, %p53_p2  ;;  %s41_s30 = ssub.s32 %s787_s19, %s1114_s5 }
  0x32   : > { %p923_p10 = por %p1100_p8, %p53_p2  ;;  %p556_p12 = scmp.lt.s32.totalorder %s791_s20, 2 }
  0x33   : > { %p44_p11 = scmp.eq.s32.totalorder %s41_s30, 0  ;;  %s197_s29 = sand.u32 1, %s779_s17  }
  0x34   : > { %s500_s9 = sshll.u32 %s197_s29, 3  ;;  %s501_s11 = sshll.u32 %s787_s19, 7 }
  0x35   : > { %s932_s10 = scalar_select %p44_p11, %s779_s17, %s46_s6  }
  0x36   : > { %s938_s14 = scalar_lea.hbm %s1084_s0, %s501_s11  ;;  %s201_s24 = scalar_lea.vmem [#allocation2], %s500_s9 }
  0x37   : > { %s209_s21 = sshll.u32 %s201_s24, 4  ;;  %p944_p13 = pnand %p556_p12, %p917_p6  ;;  %s940_s21 = int_to_ptr.vmem [resolvable:$true] %s209_s21 }
  0x38   : > { %s198_s28 = scalar_lea.sflag [#allocation3], %s197_s29  ;;  %s643_s6 = scalar_lea.hbm %s938_s14, 128 }
  0x39   : > { %p644_p0 = scmp.ne.s32.totalorder %s938_s14, %s643_s6  ;;  %p645_p3 = pneg %p944_p13 }
  0x3a   : > { %s648_s11 = scalar_lea.hbm %s1084_s0, 256  ;;  %p649_p9 = scmp.lt.u32.totalorder %s938_s14, %s1084_s0 }
  0x3b   : > { %p646_p5 = pnand %p645_p3, %p644_p0  ;;  %p650_p1 = scmp.lt.u32.totalorder %s648_s11, %s643_s6 }
  0x3c   : > { %p652_p4 = scmp.lt.u32.totalorder %s643_s6, %s938_s14 }
  0x3d   : > { %p647_p7 = pneg %p646_p5  ;;  %p651_p2 = por %p650_p1, %p649_p9 }
  0x3f   : > { %p653_p6 = por %p652_p4, %p651_p2 }
  0x41   : > { %p654_p8 = pnand %p653_p6, %p647_p7 }
  0x43   : > { %657 = shalt.err (!%p654_p8)
}
  0x44   : > { %s658_s29 = scalar_lea.vmem %s940_s21, 128  ;;  %s796_s13 = smov [#allocation2]  }
  0x45   : > { %p659_p12 = scmp.ne.s32.totalorder %s940_s21, %s658_s29  ;;  %s663_s24 = sshll.u32 %s796_s13, 4  ;;  %s664_s24 = int_to_ptr.vmem [resolvable:$false] %s663_s24 }
  0x46   : > { %s665_s30 = scalar_lea.vmem %s664_s24, 256  ;;  %p666_p5 = scmp.lt.s32.totalorder %s940_s21, %s664_s24 }
  0x47   : > { %p661_p11 = pnand %p659_p12, %p645_p3  ;;  %p667_p9 = scmp.lt.s32.totalorder %s665_s30, %s658_s29 }
  0x49   : > { %p662_p0 = pneg %p661_p11  ;;  %p668_p1 = por %p667_p9, %p666_p5 }
  0x4b   : > { %p669_p2 = pnand %p668_p1, %p662_p0 }
  0x4d   : > { %672 = shalt.err (!%p669_p2)
}
  0x4e   : > { %547 = dma.hbm_to_vmem [thread:$0]  (!%p944_p13), %s938_s14, 128, %s940_s21, %s198_s28  }
  0x4f   : > { %p1103_p7 = scmp.ne.s32.totalorder %s1097_s27, 0 }
  0x50   : > { %s976_s6 = sand.u32 (!%p1103_p7), 1, %s775_s16   ;;  %p1104_p3 = scmp.ne.s32.totalorder (!%p1103_p7), %s1095_s25, 0 }
  0x51   : > { %218 = sbr.rel (%p1103_p7) target bundleno = 446 (0x1be), region = 32  ;;  %s503_s9 = sshll.u32 (!%p1103_p7), %s976_s6, 3 }
  0x52   : > { %s221_s11 = scalar_lea.sflag (!%p1103_p7), [#allocation3], %s976_s6  ;;  %s224_s7 = scalar_lea.vmem (!%p1103_p7), [#allocation2], %s503_s9 }
  0x58   : > { %754 = dma.done.wait (%p1104_p3), %s221_s11, 128  }
  0x59   : > { %756 = vsyncadd (%p1104_p3), %s221_s11, 4294967168  ;;  %p1105_p4 = scmp.ne.s32.totalorder %s1093_s23, 0 }
  0x5b   : > { %758 = dma.done.wait (%p1105_p4), [#allocation6], 256  }
  0x5c   : > { %760 = vsyncadd (%p1105_p4), [#allocation6], 4294967040  ;;  %v797_v0 = vmov 0.0   ;;  %vm798_vm0 = vmmov 0   ;;  %v613_v1 = vld [vmem:[#allocation5] sm:$0xff]   ;;  %v614_v2 = vld [vmem:[#allocation5 + $0x8] sm:$0xff]  }
  0x5d   : > { %522 = vmatprep.subr.bf16.mxu0 %v797_v0  ;;  %526 = vmatprep.mubr.msk.bf16.mxu0 %vm798_vm0, %v797_v0  ;;  %v259_v3 = vld [vmem:[%s224_s7] sm:$0xff]  ;;  %vm284_vm1 = vcmask 261120   ;;  %s505_s25 = sshll.u32 %s976_s6, 2  ;;  %s514_s14 = sshll.u32 %s783_s18, 6  ;;  %vm329_vm2 = vcmask 257024  }
  0x5e   : > { %523 = vmatpush3.bf16.msra.mxu0 %v613_v1  ;;  %v260_v4 = vpack.c.bf16 %v259_v3, %v259_v3  ;;  %v507_v5 = vld [vmem:[%s1086_s2] ss:$0 sm:$0xff]  ;;  %s250_s21 = scalar_lea.vmem [#allocation7], %s505_s25  ;;  %s1000_s29 = scalar_lea.hbm %s1087_s3, %s514_s14 }
  0x5f   : > { %524 = vmatprep.subr.bf16.mxu0 %v797_v0  ;;  %s358_s22 = sshll.u32 %s250_s21, 4  ;;  %s799_s13 = smov 96   ;;  %s1002_s22 = int_to_ptr.vmem [resolvable:$true] %s358_s22 }
  0x60   : > { %s339_s24 = scalar_lea.sflag [#allocation4], %s976_s6  ;;  %s673_s30 = scalar_lea.vmem %s1002_s22, 64 }
  0x61   : > { %p674_p13 = scmp.ne.s32.totalorder %s1002_s22, %s673_s30  ;;  %s800_s9 = smov [#allocation7]  }
  0x62   : > { %525 = vmatpush3.bf16.msra.mxu0 %v614_v2  ;;  %s677_s11 = sshll.u32 %s800_s9, 4  ;;  %s678_s11 = int_to_ptr.vmem [resolvable:$false] %s677_s11 }
  0x63   : > { %p675_p6 = pnand %p674_p13, %p923_p10  ;;  %s679_s7 = scalar_lea.vmem %s678_s11, 128 }
  0x64   : > { %p680_p12 = scmp.lt.s32.totalorder %s1002_s22, %s678_s11  ;;  %p681_p11 = scmp.lt.s32.totalorder %s679_s7, %s673_s30 }
  0x65   : > { %527 = vmatmul.mubr.msk.bf16.vlgmr.msra.gmra.mrb[0].mxu0 %vm284_vm1, %v260_v4  ;;  %p676_p8 = pneg %p675_p6 }
  0x66   : > { %p682_p0 = por %p681_p11, %p680_p12 }
  0x68   : > { %p683_p5 = pnand %p682_p0, %p676_p8 }
 0x138   : > { %v322_v6 = vpop.f32.mrb[0].mxu0 }
 0x139   : > { %v323_v7 = vadd.f32 %v507_v5, %v322_v6  ;;  %v528_v8 = vpop.f32.mrb[1].mxu0 }
 0x13a   : > { %v325_v9 = vpop.f32.mrb[2].mxu0 }
 0x13b   : > { %v328_v10 = vpack.c.bf16 %v323_v7, %v323_v7  ;;  %v529_v11 = vpop.f32.mrb[3].mxu0 }
 0x13d   : > { %334 = vrot.lane.b32.xlu0 %v328_v10, %s799_s13  ;;  %330 = vst.msk [vmem:[%s250_s21] sm:$0xf] %vm329_vm2, %v328_v10 }
 0x13e   : > { %686 = shalt.err (!%p683_p5)
}
 0x13f   : > { %s687_s23 = scalar_lea.hbm %s1000_s29, 64  ;;  %s691_s28 = scalar_lea.hbm %s1087_s3, 128 }
 0x140   : > { %p688_p9 = scmp.ne.s32.totalorder %s1000_s29, %s687_s23  ;;  %p692_p7 = scmp.lt.u32.totalorder %s1000_s29, %s1087_s3 }
 0x141   : > { %p693_p3 = scmp.lt.u32.totalorder %s691_s28, %s687_s23  ;;  %p695_p13 = scmp.lt.u32.totalorder %s687_s23, %s1000_s29 }
 0x142   : > { %p689_p1 = pnand %p688_p9, %p923_p10 }
 0x143   : > { %p694_p4 = por %p693_p3, %p692_p7 }
 0x144   : > { %p690_p2 = pneg %p689_p1 }
 0x145   : > { %p696_p6 = por %p695_p13, %p694_p4 }
 0x147   : > { %p697_p8 = pnand %p696_p6, %p690_p2 }
 0x149   : > { %700 = shalt.err (!%p697_p8)
}
 0x14a   : > { %536 = dma.vmem_to_hbm [thread:$0]  (%p923_p10), %s1002_s22, 64, %s1000_s29, %s339_s24  }
 0x14b   : > { %s257_s30 = scalar_lea.vmem [#allocation8], %s505_s25  ;;  %s1034_s23 = scalar_lea.hbm %s1088_s4, %s514_s14 }
 0x14c   : > { %s372_s9 = sshll.u32 %s257_s30, 4  ;;  %s344_s27 = scalar_lea.sflag [#allocation9], %s976_s6  ;;  %s1036_s9 = int_to_ptr.vmem [resolvable:$true] %s372_s9 }
 0x14d   : > { %s701_s21 = scalar_lea.vmem %s1036_s9, 64  ;;  %s801_s18 = smov [#allocation8]  }
 0x14e   : > { %p702_p12 = scmp.ne.s32.totalorder %s1036_s9, %s701_s21  ;;  %s705_s25 = sshll.u32 %s801_s18, 4  ;;  %s706_s25 = int_to_ptr.vmem [resolvable:$false] %s705_s25 }
 0x14f   : > { %s707_s22 = scalar_lea.vmem %s706_s25, 128  ;;  %p708_p5 = scmp.lt.s32.totalorder %s1036_s9, %s706_s25 }
 0x150   : > { %p703_p11 = pnand %p702_p12, %p923_p10  ;;  %p709_p9 = scmp.lt.s32.totalorder %s707_s22, %s701_s21 }
 0x152   : > { %p704_p0 = pneg %p703_p11  ;;  %p710_p1 = por %p709_p9, %p708_p5 }
 0x154   : > { %p711_p2 = pnand %p710_p1, %p704_p0 }
 0x1af   : > { %v335_v12 = vpop.permute.xlu0 %334 }
 0x1b0   : > { %337 = vst.msk [vmem:[%s257_s30] sm:$0xf] %vm329_vm2, %v335_v12 }
 0x1b1   : > { %714 = shalt.err (!%p711_p2)
}
 0x1b2   : > { %s715_s6 = scalar_lea.hbm %s1034_s23, 64  ;;  %s719_s24 = scalar_lea.hbm %s1088_s4, 128 }
 0x1b3   : > { %p716_p7 = scmp.ne.s32.totalorder %s1034_s23, %s715_s6  ;;  %p720_p13 = scmp.lt.u32.totalorder %s1034_s23, %s1088_s4 }
 0x1b4   : > { %p721_p6 = scmp.lt.u32.totalorder %s719_s24, %s715_s6  ;;  %p723_p12 = scmp.lt.u32.totalorder %s715_s6, %s1034_s23 }
 0x1b5   : > { %p717_p3 = pnand %p716_p7, %p923_p10 }
 0x1b6   : > { %p722_p8 = por %p721_p6, %p720_p13 }
 0x1b7   : > { %p718_p4 = pneg %p717_p3 }
 0x1b8   : > { %p724_p11 = por %p723_p12, %p722_p8 }
 0x1ba   : > { %p725_p0 = pnand %p724_p11, %p718_p4 }
 0x1bc   : > { %728 = shalt.err (!%p725_p0)
}
 0x1bd   : > { %537 = dma.vmem_to_hbm [thread:$0]  (%p923_p10), %s1036_s9, 64, %s1034_s23, %s344_s27  }
 0x1be PF: > { %s384_s13 = sand.u32 1, %s771_s15   ;;  %p1106_p5 = scmp.ne.s32.totalorder %s1096_s26, 0 }
 0x1bf   : > { %p1107_p9 = scmp.ge.s32.totalorder %s791_s20, 2  ;;  %s385_s30 = scalar_lea.sflag [#allocation4], %s384_s13 }
 0x1c1   : > { %p549_p1 = pnand %p1107_p9, %p1106_p5 }
 0x1c3   : > { %762 = dma.done.wait (!%p549_p1), %s385_s30, 64  }
 0x1c4   : > { %764 = vsyncadd (!%p549_p1), %s385_s30, 4294967232  ;;  %s394_s11 = scalar_lea.sflag [#allocation9], %s384_s13 }
 0x1c5   : > { %766 = dma.done.wait (!%p549_p1), %s394_s11, 64  }
 0x1c6   : > { %768 = vsyncadd (!%p549_p1), %s394_s11, 4294967232  ;;  %s25_s20 = sadd.s32 1, %s791_s20   ;;  %s1108_s15 = smov %s775_s16 }
 0x1c7   : > { %p22_p2 = scmp.ge.s32.totalorder %s25_s20, 4   ;;  %s1109_s16 = smov %s779_s17 }
 0x1c8   : > { %s1110_s17 = smov %s932_s10  ;;  %s1111_s18 = smov %s787_s19 }
 0x1c9   : > { %s1112_s19 = smov %s1114_s5  ;;  %24 = sbr.rel (!%p22_p2) target bundleno = 9 (0x9), region = 98 }
 0x1d0   :  { %399 = vsyncpa [#allocation3], 1 }
 0x1d1   :  { %401 = vsyncpa [#allocation3 + $0x1], 1 }
 0x1d2   :  { %402 = vsyncpa [#allocation6], 1 }
 0x1d3   :  { %403 = vsyncpa [#allocation4], 1 }
 0x1d4   :  { %405 = vsyncpa [#allocation4 + $0x1], 1 }
 0x1d5   :  { %406 = vsyncpa [#allocation9], 1 }
 0x1d6   :  { %408 = vsyncpa [#allocation9 + $0x1], 1 }

</bundles_post_ra>
